<compile_context>
chip_gen: v7x
topology: tpu7x:2x2x1
jax: 0.10.0
libtpu: 0.0.40
codegen_flags: <defaults>
</compile_context>

<pallas_src>
import functools

import numpy as np
import jax
import jax.numpy as jnp
from jax import lax
from jax.experimental import pallas as pl
from jax.experimental.pallas import tpu as pltpu


def _round_up(x, m):
    return ((x + m - 1) // m) * m


def _vmem_limit_bytes():
    # v7x has only 64 MiB physical VMEM -> stay at 48 MiB; v5e/v6e (128 MiB) can go higher.
    try:
        kind = jax.devices()[0].device_kind.lower()
    except Exception:
        return 48 * 1024 * 1024
    if ("v5" in kind) or ("v6" in kind):
        return 96 * 1024 * 1024
    return 48 * 1024 * 1024


_VMEM = _vmem_limit_bytes()


# ----------------------------------------------------------------------------- fc1 (Linear+ReLU)

def _fc1_kernel(x_ref, w_ref, b_ref, o_ref):
    x = x_ref[...].astype(jnp.bfloat16)
    y = jnp.dot(x, w_ref[...], preferred_element_type=jnp.float32) + b_ref[...]
    o_ref[...] = jnp.maximum(y, 0.0).astype(o_ref.dtype)


def fc1_relu(x, w_bf16, b, *, tm=512):
    M, K = x.shape
    N = w_bf16.shape[1]
    tm = min(tm, _round_up(M, 8))
    Mp = _round_up(M, tm)
    if Mp != M:
        x = jnp.pad(x, ((0, Mp - M), (0, 0)))
    out = pl.pallas_call(
        _fc1_kernel,
        out_shape=jax.ShapeDtypeStruct((Mp, N), jnp.float32),
        grid=(Mp // tm,),
        in_specs=[pl.BlockSpec((tm, K), lambda i: (i, 0)),
                  pl.BlockSpec((K, N), lambda i: (0, 0)),
                  pl.BlockSpec((1, N), lambda i: (0, 0))],
        out_specs=pl.BlockSpec((tm, N), lambda i: (i, 0)),
        compiler_params=pltpu.CompilerParams(dimension_semantics=("parallel",),
                                             vmem_limit_bytes=_VMEM),
    )(x, w_bf16, b.reshape(1, N))
    return out[:M]


# ----------------------------------------------------------------------------- LayerNorm + fused QKV projection

def _ln_qkv_kernel(x_ref, g_ref, b_ref, w_ref, o_ref):
    x = x_ref[...].astype(jnp.float32)
    mu = jnp.mean(x, axis=-1, keepdims=True)
    var = jnp.mean((x - mu) ** 2, axis=-1, keepdims=True)
    y = ((x - mu) * lax.rsqrt(var + 1e-5)) * g_ref[...] + b_ref[...]
    # qkv^T computed directly on the MXU (contract D of both operands) -> no in-kernel transpose.
    qkv_t = lax.dot_general(w_ref[...], y.astype(jnp.bfloat16),
                            (((0,), (1,)), ((), ())),
                            preferred_element_type=jnp.float32)            # (3D, blk)
    o_ref[...] = qkv_t.astype(o_ref.dtype)


def ln_qkv(x, g, b, w_qkv_bf16, *, blk):
    B, S, D = x.shape
    D3 = w_qkv_bf16.shape[1]
    return pl.pallas_call(
        _ln_qkv_kernel,
        out_shape=jax.ShapeDtypeStruct((B, D3, S), jnp.bfloat16),
        grid=(B, S // blk),
        in_specs=[pl.BlockSpec((None, blk, D), lambda bi, i: (bi, i, 0)),
                  pl.BlockSpec((1, D), lambda bi, i: (0, 0)),
                  pl.BlockSpec((1, D), lambda bi, i: (0, 0)),
                  pl.BlockSpec((D, D3), lambda bi, i: (0, 0))],
        out_specs=pl.BlockSpec((None, D3, blk), lambda bi, i: (bi, 0, i)),
        compiler_params=pltpu.CompilerParams(dimension_semantics=("parallel", "parallel"),
                                             vmem_limit_bytes=_VMEM),
    )(x, g.reshape(1, D), b.reshape(1, D), w_qkv_bf16)


# ----------------------------------------------------------------------------- TransLayer (flash MHSA, heads batched)

def _flash_attn_kernel(x_ref, qT_ref, kT_ref, vT_ref, wo_ref, bo_ref, *rest,
                       heads, dim_head, blk_kv, s_valid, fuse_final):
    if fuse_final:
        gf_ref, bf_ref, o_ref, m_scr, l_scr, acc_scr = rest
    else:
        o_ref, m_scr, l_scr, acc_scr = rest

    ki = pl.program_id(2)
    D = heads * dim_head
    blk_q = qT_ref.shape[-1]

    @pl.when(ki == 0)
    def _init():
        m_scr[...] = jnp.full(m_scr.shape, -1e30, jnp.float32)
        l_scr[...] = jnp.zeros(l_scr.shape, jnp.float32)
        acc_scr[...] = jnp.zeros(acc_scr.shape, jnp.float32)

    # Head-batched QK^T and P.V in the transposed (D, rows) layout: reshapes below split a
    # leading dim only (layout-free), so no per-head lane slices / relayouts in the loop.
    q3 = qT_ref[...].reshape(heads, dim_head, blk_q)        # bf16; q pre-scaled host-side
    k3 = kT_ref[...].reshape(heads, dim_head, blk_kv)
    v3 = vT_ref[...].reshape(heads, dim_head, blk_kv)

    s = lax.dot_general(q3, k3, (((1,), (1,)), ((0,), (0,))),
                        preferred_element_type=jnp.float32)  # (heads, blk_q, blk_kv)

    # One additive key-padding bias shared by all heads.  -inf (with finite m init) keeps a
    # fully-masked kv block exact: p == 0 for every masked key, so l / acc stay untouched.
    key_pos = ki * blk_kv + lax.broadcasted_iota(jnp.int32, (1, 1, blk_kv), 2)
    s = s + jnp.where(key_pos < s_valid, 0.0, -jnp.inf)

    m_prev = m_scr[...]                                      # (heads, blk_q)
    m_new = jnp.maximum(m_prev, jnp.max(s, axis=-1))
    alpha = jnp.exp(m_prev - m_new)
    p = jnp.exp(s - m_new[:, :, None])
    l_scr[...] = alpha * l_scr[...] + jnp.sum(p, axis=-1)
    m_scr[...] = m_new

    pv_t = lax.dot_general(v3, p.astype(jnp.bfloat16), (((2,), (2,)), ((0,), (0,))),
                           preferred_element_type=jnp.float32)  # (heads, dim_head, blk_q)
    acc_scr[...] = acc_scr[...] * alpha[:, None, :] + pv_t

    @pl.when(ki == pl.num_programs(2) - 1)
    def _finalize():
        # approx reciprocal: deliberate (EUP) precision trade-off for attention normalization.
        inv_l = pl.reciprocal(l_scr[...], approx=True)          # (heads, blk_q)
        attn_t = (acc_scr[...] * inv_l[:, None, :]).reshape(D, blk_q)
        # proj = attn @ Wo computed by contracting D of both operands -> no transpose needed.
        proj = lax.dot_general(attn_t.astype(jnp.bfloat16), wo_ref[...],
                               (((0,), (0,)), ((), ())),
                               preferred_element_type=jnp.float32)      # (blk_q, D)
        y = x_ref[...].astype(jnp.float32) + proj + bo_ref[...]
        if fuse_final:                                          # fused final nn.LayerNorm
            mu = jnp.mean(y, axis=-1, keepdims=True)
            var = jnp.mean((y - mu) ** 2, axis=-1, keepdims=True)
            y = ((y - mu) * lax.rsqrt(var + 1e-5)) * gf_ref[...] + bf_ref[...]
        o_ref[...] = y.astype(o_ref.dtype)


def translayer(x, lp, *, s_valid, blk, heads=8, final_norm=None):
    B, S, D = x.shape
    assert D % heads == 0
    dim_head = D // heads
    nq = nkv = S // blk
    fuse_final = final_norm is not None

    # pass 1: LayerNorm + QKV projection once per token (transposed bf16 output).
    qkv_t = ln_qkv(x, lp['ln_g'], lp['ln_b'], lp['w_qkv_bf16'], blk=blk)

    in_specs = [pl.BlockSpec((None, blk, D), lambda b, qi, ki: (b, qi, 0)),   # residual x
                pl.BlockSpec((None, D, blk), lambda b, qi, ki: (b, 0, qi)),   # Q^T
                pl.BlockSpec((None, D, blk), lambda b, qi, ki: (b, 1, ki)),   # K^T
                pl.BlockSpec((None, D, blk), lambda b, qi, ki: (b, 2, ki)),   # V^T
                pl.BlockSpec((D, D), lambda b, qi, ki: (0, 0)),
                pl.BlockSpec((1, D), lambda b, qi, ki: (0, 0))]
    args = [x, qkv_t, qkv_t, qkv_t, lp['w_out_bf16'], lp['b_out'].reshape(1, D)]
    if fuse_final:
        g2, b2 = final_norm
        in_specs += [pl.BlockSpec((1, D), lambda b, qi, ki: (0, 0)),
                     pl.BlockSpec((1, D), lambda b, qi, ki: (0, 0))]
        args += [g2.reshape(1, D), b2.reshape(1, D)]

    # TODO(synk): for B==1, S_pad<=blk single-bag inference on v7x, add a parallel head-group
    #             grid axis so the second TensorCore has work; here B*nq already provides it.
    kernel = functools.partial(_flash_attn_kernel, heads=heads, dim_head=dim_head,
                               blk_kv=blk, s_valid=s_valid, fuse_final=fuse_final)
    return pl.pallas_call(
        kernel,
        out_shape=jax.ShapeDtypeStruct((B, S, D), jnp.float32),
        grid=(B, nq, nkv),
        in_specs=in_specs,
        out_specs=pl.BlockSpec((None, blk, D), lambda b, qi, ki: (b, qi, 0)),
        scratch_shapes=[pltpu.VMEM((heads, blk), jnp.float32),            # running max
                        pltpu.VMEM((heads, blk), jnp.float32),            # running denominator
                        pltpu.VMEM((heads, dim_head, blk), jnp.float32)], # running numerator^T
        compiler_params=pltpu.CompilerParams(
            dimension_semantics=("parallel", "parallel", "arbitrary"),
            vmem_limit_bytes=_VMEM),
    )(*args)


# ----------------------------------------------------------------------------- PPEG (folded depthwise convs)

def _ppeg_kernel(x_ref, w_ref, b_ref, o_ref, *, H, W):
    S, C = x_ref.shape
    HW = H * W
    x = x_ref[...].astype(jnp.float32)
    w = w_ref[...]                                        # (49, C) folded depthwise weight
    b = b_ref[...]                                        # (1, C)  folded bias

    r = lax.broadcasted_iota(jnp.int32, (S, 1), 0)        # full-sequence row index
    p = r - 1                                             # pixel index (garbage outside feat rows)
    pi = p // W
    pj = p - pi * W
    is_feat = (r >= 1) & (r <= HW)                        # row 0 = cls, > HW = padding

    acc = jnp.zeros((S, C), jnp.float32)
    for kh in range(7):
        dh = kh - 3
        for kw in range(7):
            dw = kw - 3
            shift = dh * W + dw                           # 2-D tap == row shift on flat tokens
            rolled = x if shift == 0 else pltpu.roll(x, (-shift) % S, axis=0)
            valid = ((pi + dh >= 0) & (pi + dh < H) & (pj + dw >= 0) & (pj + dw < W))
            acc = acc + jnp.where(valid, rolled * w[kh * 7 + kw:kh * 7 + kw + 1, :], 0.0)

    # cls / padded rows pass through; one aligned full-block store (no offset slices).
    o_ref[...] = jnp.where(is_feat, acc + b, x).astype(o_ref.dtype)


def ppeg(x, pp, H, W):
    B, S, C = x.shape
    # Fold identity + 7x7 + 5x5 + 3x3 depthwise convs into one exact effective 7x7 kernel.
    w_eff = pp['w7']
    w_eff = w_eff.at[1:6, 1:6, :].add(pp['w5'])
    w_eff = w_eff.at[2:5, 2:5, :].add(pp['w3'])
    w_eff = w_eff.at[3, 3, :].add(1.0)
    w_flat = w_eff.reshape(49, C)
    b_eff = (pp['b7'] + pp['b5'] + pp['b3']).reshape(1, C)

    # TODO(synk): for very large WSI bags, tile the HW axis with a +/-3*W halo (manual DMA) so the
    #             per-batch block stays within v7x's 64 MiB VMEM; full-block is fine at this size.
    kernel = functools.partial(_ppeg_kernel, H=H, W=W)
    return pl.pallas_call(
        kernel,
        out_shape=jax.ShapeDtypeStruct((B, S, C), jnp.float32),
        grid=(B,),
        in_specs=[pl.BlockSpec((None, S, C), lambda b: (b, 0, 0)),
                  pl.BlockSpec((49, C), lambda b: (0, 0)),
                  pl.BlockSpec((1, C), lambda b: (0, 0))],
        out_specs=pl.BlockSpec((None, S, C), lambda b: (b, 0, 0)),
        compiler_params=pltpu.CompilerParams(dimension_semantics=("parallel",),
                                             vmem_limit_bytes=_VMEM),
    )(x, w_flat, b_eff)


# ----------------------------------------------------------------------------- forward (glue)

def transmil_forward(params, h):
    if h.ndim == 2:
        h = h[None]                                        # matches h.unsqueeze(0)
    B, N, D0 = h.shape
    D = params['fc1_w'].shape[1]
    heads = 8
    scale = 1.0 / float(np.sqrt(D // heads))

    H_ = int(np.ceil(np.sqrt(N)))
    W_ = H_
    HW = H_ * W_
    add_length = HW - N
    S_valid = HW + 1                                       # cls + square-padded tokens
    S_pad = _round_up(S_valid, 128)
    blk = 256 if S_pad % 256 == 0 else 128                 # bigger tiles when the bag allows it

    # Pre-cast matmul weights to bf16 once; fold the attention scale into the Q columns.
    fc1_w = params['fc1_w'].astype(jnp.bfloat16)

    def prep_layer(lp):
        w = lp['w_qkv']
        w = jnp.concatenate([w[:, :D] * scale, w[:, D:]], axis=1).astype(jnp.bfloat16)
        return {'ln_g': lp['ln_g'], 'ln_b': lp['ln_b'], 'w_qkv_bf16': w,
                'w_out_bf16': lp['w_out'].astype(jnp.bfloat16), 'b_out': lp['b_out']}

    l1 = prep_layer(params['l1'])
    l2 = prep_layer(params['l2'])

    # _fc1: Linear + ReLU (row-tiled Pallas kernel)
    x = fc1_relu(h.reshape(B * N, D0), fc1_w, params['fc1_b']).reshape(B, N, D)

    # Sequence assembly in one concatenate: [cls | tokens | wrap-around fill | zero padding].
    cls = jnp.broadcast_to(params['cls_token'].astype(jnp.float32), (B, 1, D))
    pieces = [cls, x]
    if add_length > 0:
        pieces.append(x[:, :add_length, :])
    if S_pad > S_valid:
        pieces.append(jnp.zeros((B, S_pad - S_valid, D), jnp.float32))
    x = jnp.concatenate(pieces, axis=1)                    # (B, S_pad, D)

    x = translayer(x, l1, s_valid=S_valid, blk=blk, heads=heads)           # layer1
    x = ppeg(x, params['ppeg'], H_, W_)                                    # PPEG
    h_norm = translayer(x, l2, s_valid=S_valid, blk=blk, heads=heads,      # layer2 + fused norm
                        final_norm=(params['norm_g'], params['norm_b']))

    h_cls = h_norm[:, 0]
    h_feat = h_norm[:, 1:S_valid]
    logits = h_cls @ params['fc2_w'] + params['fc2_b']     # tiny (B,D)@(D,nC): left to XLA (exact)
    y_prob = jax.nn.softmax(logits, axis=-1)
    y_hat = jnp.argmax(logits, axis=1)
    return {'logits': logits, 'Y_prob': y_prob, 'Y_hat': y_hat,
            'h_feat': h_feat, 'h_cls': h_cls}


# ----------------------------------------------------------------------------- params

def init_params(key, d0, d1, n_classes):
    keys = iter(jax.random.split(key, 32))

    def nrm(shape, scale=0.02):
        return (scale * jax.random.normal(next(keys), shape)).astype(jnp.float32)

    def trans_layer():
        return {'ln_g': jnp.ones((d1,), jnp.float32),
                'ln_b': jnp.zeros((d1,), jnp.float32),
                'w_qkv': nrm((d1, 3 * d1)),
                'w_out': nrm((d1, d1)),
                'b_out': nrm((d1,))}

    return {
        'fc1_w': nrm((d0, d1)),
        'fc1_b': nrm((d1,)),
        'cls_token': nrm((1, 1, d1)),
        'l1': trans_layer(),
        'l2': trans_layer(),
        'ppeg': {'w7': nrm((7, 7, d1)), 'b7': nrm((d1,)),
                 'w5': nrm((5, 5, d1)), 'b5': nrm((d1,)),
                 'w3': nrm((3, 3, d1)), 'b3': nrm((d1,))},
        'norm_g': jnp.ones((d1,), jnp.float32),
        'norm_b': jnp.zeros((d1,), jnp.float32),
        'fc2_w': nrm((d1, n_classes)),
        'fc2_b': nrm((n_classes,)),
    }


if __name__ == "__main__":
    # model_size = 'dino_ss' -> size = [384, 64, 32]; dim = size[1] = 64; n_classes = 2
    D0, D1, N_CLASSES = 384, 64, 2
    key = jax.random.PRNGKey(0)
    pkey, xkey = jax.random.split(key)
    params = init_params(pkey, D0, D1, N_CLASSES)

    B, N = 2, 60                                           # N=60 -> 8x8 grid, wrap-pad 4, 65 tokens
    h = jax.random.normal(xkey, (B, N, D0), dtype=jnp.float32)

    out = transmil_forward(params, h)
    jax.block_until_ready(out)

    assert out['logits'].shape == (B, N_CLASSES)
    assert out['Y_prob'].shape == (B, N_CLASSES)
    assert out['Y_hat'].shape == (B,)
    assert out['h_feat'].shape == (B, 64, D1)
    assert out['h_cls'].shape == (B, D1)
    assert bool(jnp.all(jnp.isfinite(out['logits'])))
    assert bool(jnp.all(jnp.isfinite(out['h_feat'])))
    print("KERNEL_OK")
</pallas_src>

<mosaic_0001>
module attributes {stable_mosaic.version = 11 : i64} {
  func.func @_fc1_kernel(%arg0: i32, %arg1: memref<120x384xf32, #tpu.memory_space<vmem>>, %arg2: memref<384x64xbf16, #tpu.memory_space<vmem>>, %arg3: memref<1x64xf32, #tpu.memory_space<vmem>>, %arg4: memref<120x64xf32, #tpu.memory_space<vmem>>) attributes {dimension_semantics = [#tpu.dimension_semantics<parallel>], iteration_bounds = array<i64: 1>, scalar_prefetch = 0 : i64, scratch_operands = 0 : i64, tpu.core_type = #tpu.core_type<tc>, window_params = [{transform_indices = @transform_0, window_bounds = array<i64: 120, 384>}, {pipeline_mode = #tpu.pipeline_mode<synchronous>, transform_indices = @transform_1, window_bounds = array<i64: 384, 64>}, {pipeline_mode = #tpu.pipeline_mode<synchronous>, transform_indices = @transform_2, window_bounds = array<i64: 1, 64>}, {transform_indices = @transform_3, window_bounds = array<i64: 120, 64>}]} {
    %c0 = arith.constant 0 : index
    %c0_0 = arith.constant 0 : index
    %0 = vector.load %arg1[%c0, %c0_0] : memref<120x384xf32, #tpu.memory_space<vmem>>, vector<120x384xf32>
    %1 = arith.truncf %0 : vector<120x384xf32> to vector<120x384xbf16>
    %c0_1 = arith.constant 0 : index
    %c0_2 = arith.constant 0 : index
    %2 = vector.load %arg2[%c0_1, %c0_2] : memref<384x64xbf16, #tpu.memory_space<vmem>>, vector<384x64xbf16>
    %cst = arith.constant dense<0.000000e+00> : vector<120x64xf32>
    %3 = tpu.matmul %1, %2, %cst {dimension_numbers = #tpu.dot_dimension_numbers<[1], [0], [0], [1], [0, 0, 1, 1], [], []>} : vector<120x384xbf16>, vector<384x64xbf16>, vector<120x64xf32> -> vector<120x64xf32>
    %c0_3 = arith.constant 0 : index
    %c0_4 = arith.constant 0 : index
    %4 = vector.load %arg3[%c0_3, %c0_4] : memref<1x64xf32, #tpu.memory_space<vmem>>, vector<1x64xf32>
    %5 = vector.broadcast %4 : vector<1x64xf32> to vector<120x64xf32>
    %6 = arith.addf %3, %5 : vector<120x64xf32>
    %cst_5 = arith.constant 0.000000e+00 : f32
    %7 = vector.broadcast %cst_5 : f32 to vector<120x64xf32>
    %8 = arith.maximumf %6, %7 : vector<120x64xf32>
    %c0_6 = arith.constant 0 : index
    %c0_7 = arith.constant 0 : index
    %9 = vector.load %arg4[%c0_6, %c0_7] : memref<120x64xf32, #tpu.memory_space<vmem>>, vector<120x64xf32>
    tpu.vector_store %arg4[%c0_6, %c0_7], %8 {strides = array<i32>} : memref<120x64xf32, #tpu.memory_space<vmem>>, vector<120x64xf32>,
    return
  }
  func.func @transform_0(%arg0: i32) -> (i32, i32) {
    %c0_i32 = arith.constant 0 : i32
    %c0_i32_0 = arith.constant 0 : i32
    return %arg0, %c0_i32 : i32, i32
  }
  func.func @transform_1(%arg0: i32) -> (i32, i32) {
    %c0_i32 = arith.constant 0 : i32
    %c0_i32_0 = arith.constant 0 : i32
    %c0_i32_1 = arith.constant 0 : i32
    return %c0_i32, %c0_i32_0 : i32, i32
  }
  func.func @transform_2(%arg0: i32) -> (i32, i32) {
    %c0_i32 = arith.constant 0 : i32
    %c0_i32_0 = arith.constant 0 : i32
    %c0_i32_1 = arith.constant 0 : i32
    return %c0_i32, %c0_i32_0 : i32, i32
  }
  func.func @transform_3(%arg0: i32) -> (i32, i32) {
    %c0_i32 = arith.constant 0 : i32
    %c0_i32_0 = arith.constant 0 : i32
    return %arg0, %c0_i32 : i32, i32
  }
}

</mosaic_0001>

<bundles_post_ra>
// kernel: tpu_custom_call.1
= control target key start
LH: loop header
LB: loop body
LE: loop exit
PB: predicated region body
PF: predicated region fallthrough
CT: control target
= control target key end

     0   :  { %8 = vsyncpa [#allocation3], 0  ;;  %s713_s12 = smov [#allocation2]   ;;  %s900_s0 = inlined_call_operand.hbm [shape: f32[120,384], index: 0, kind: input, shape index: {}]   ;;  %s901_s1 = inlined_call_operand.vmem [shape: bf16[384,64], index: 1, kind: input, shape index: {}]   ;;  %s902_s2 = inlined_call_operand.vmem [shape: f32[1,64], index: 2, kind: input, shape index: {}]   ;;  %s903_s3 = inlined_call_operand.vmem [shape: f32[120,64], index: 3, kind: output, shape index: {}]  }
   0x1   :  { %s14_s13 = sshll.u32 %s713_s12, 4  ;;  %s689_s16 = scalar_lea.hbm %s900_s0, 5760  ;;  %s15_s13 = int_to_ptr.vmem [resolvable:$true] %s14_s13 }
   0x2   :  { %p690_p0 = scmp.ne.s32.totalorder %s900_s0, %s689_s16  ;;  %p693_p1 = scmp.lt.u32.totalorder %s689_s16, %s900_s0 }
   0x4   :  { %p695_p2 = pnand %p693_p1, %p690_p0 }
   0x6   :  { %698 = shalt.err (!%p695_p2)
}
   0x7   :  { %s699_s21 = scalar_lea.vmem %s15_s13, 5760  ;;  %p704_p4 = scmp.lt.s32.totalorder %s15_s13, %s15_s13 }
   0x8   :  { %p700_p3 = scmp.ne.s32.totalorder %s15_s13, %s699_s21  ;;  %p705_p5 = scmp.lt.s32.totalorder %s699_s21, %s699_s21 }
   0xa   :  { %p706_p6 = por %p705_p5, %p704_p4 }
   0xc   :  { %p707_p7 = pnand %p706_p6, %p700_p3 }
   0xe   :  { %710 = shalt.err (!%p707_p7)
}
   0xf   :  { %s714_s22 = smov 384   ;;  %s715_s23 = smov 24  }
  0x10   :  { %20 = dma.hbm_to_vmem [thread:$0]  %s900_s0, 5760, %s15_s13, [#allocation3], %s714_s22, %s714_s22, %s715_s23  }
  0x11   :  { %711 = dma.done.wait [#allocation3], 5760  }
  0x12   :  { %712 = vsyncadd [#allocation3], 4294961536  ;;  %v665_v0 = vld [vmem:[%s901_s1 + $0x40] sm:$0xff]   ;;  %v667_v2 = vld [vmem:[%s901_s1 + $0x48] sm:$0xff]   ;;  %vm504_vm0 = vcmask 523264  }
  0x13   :  { %v666_v1 = vld [vmem:[%s901_s1] sm:$0xff]   ;;  %550 = vmatprep.subr.bf16.mxu0 %v665_v0  ;;  %v669_v4 = vld [vmem:[%s901_s1 + $0x8] sm:$0xff]   ;;  %v670_v5 = vld [vmem:[%s901_s1 + $0x50] sm:$0xff]  }
  0x14   :  { %551 = vmatpush3.bf16.msra.mxu0 %v666_v1  ;;  %v668_v3 = vld [vmem:[%s901_s1 + $0x80] sm:$0xff]   ;;  %v671_v6 = vld [vmem:[%s901_s1 + $0x88] sm:$0xff]   ;;  %v672_v7 = vld [vmem:[%s901_s1 + $0x10] sm:$0xff]  }
  0x15   :  { %552 = vmatprep.subr.bf16.mxu0 %v667_v2  ;;  %630 = vmatprep.subr.bf16.mxu1 %v668_v3  ;;  %v673_v8 = vld [vmem:[%s901_s1 + $0x58] sm:$0xff]   ;;  %v674_v9 = vld [vmem:[%s901_s1 + $0x90] sm:$0xff]   ;;  %v676_v11 = vld [vmem:[%s901_s1 + $0x60] sm:$0xff]  }
  0x16   :  { %631 = vmatpush3.bf16.msra.mxu1 %v668_v3  ;;  %v675_v10 = vld [vmem:[%s901_s1 + $0x18] sm:$0xff]   ;;  %v678_v13 = vld [vmem:[%s901_s1 + $0x20] sm:$0xff]   ;;  %v679_v15 = vld [vmem:[%s901_s1 + $0x68] sm:$0xff]  }
  0x17   :  { %632 = vmatprep.subr.bf16.mxu1 %v671_v6  ;;  %v677_v12 = vld [vmem:[%s901_s1 + $0x98] sm:$0xff]   ;;  %v680_v14 = vld [vmem:[%s901_s1 + $0xa0] sm:$0xff]   ;;  %v681_v16 = vld [vmem:[%s901_s1 + $0x28] sm:$0xff]  }
  0x18   :  { %553 = vmatpush3.bf16.msra.mxu0 %v669_v4  ;;  %v683_v17 = vld [vmem:[%s901_s1 + $0xa8] sm:$0xff]   ;;  %v682_v18 = vld [vmem:[%s901_s1 + $0x70] sm:$0xff]   ;;  %v33_v22 = vld [vmem:[#allocation2 + $0x20] sm:$0xff] }
  0x19   :  { %554 = vmatprep.subr.bf16.mxu0 %v670_v5  ;;  %v684_v19 = vld [vmem:[%s901_s1 + $0x30] sm:$0xff]   ;;  %v30_v21 = vld [vmem:[#allocation2 + $0x8] sm:$0xff]  ;;  %v685_v23 = vld [vmem:[%s901_s1 + $0x78] sm:$0xff]  }
  0x1a   :  { %633 = vmatpush3.bf16.msra.mxu1 %v671_v6  ;;  %v686_v20 = vld [vmem:[%s901_s1 + $0xb0] sm:$0xff]   ;;  %v75_v24 = vpack.c.bf16 %v33_v22, %v30_v21  ;;  %v34_v26 = vld [vmem:[#allocation2 + $0x28] sm:$0xff]  ;;  %v687_v27 = vld [vmem:[%s901_s1 + $0x38] sm:$0xff]  }
  0x1b   :  { %634 = vmatprep.subr.bf16.mxu1 %v674_v9  ;;  %v31_v25 = vld [vmem:[#allocation2 + $0x10] sm:$0xff]  ;;  %v29_v29 = vld [vmem:[#allocation2] sm:$0xff]  ;;  %v32_v30 = vld [vmem:[#allocation2 + $0x18] sm:$0xff] }
  0x1c   :  { %555 = vmatpush3.bf16.msra.mxu0 %v672_v7  ;;  %329 = vmatprep.mubr.bf16.mxu0 %v75_v24  ;;  %v76_v28 = vpack.c.bf16 %v34_v26, %v31_v25  ;;  %v688_v31 = vld [vmem:[%s901_s1 + $0xb8] sm:$0xff]   ;;  %v39_v33 = vld [vmem:[#allocation2 + $0x50] sm:$0xff]  ;;  %v74_v34 = vpack.c.bf16 %v32_v30, %v29_v29  ;;  %v37_v35 = vld [vmem:[#allocation2 + $0x40] sm:$0xff] }
  0x1d   :  { %556 = vmatprep.subr.bf16.mxu0 %v673_v8  ;;  %v36_v32 = vld [vmem:[#allocation2 + $0x38] sm:$0xff]  ;;  %v43_v38 = vld [vmem:[#allocation2 + $0x70] sm:$0xff]  ;;  %v46_v39 = vld [vmem:[#allocation2 + $0x88] sm:$0xff] }
  0x1e   :  { %635 = vmatpush3.bf16.msra.mxu1 %v674_v9  ;;  %646 = vmatprep.mubr.bf16.mxu1 %v76_v28  ;;  %v40_v36 = vld [vmem:[#allocation2 + $0x58] sm:$0xff]  ;;  %v78_v37 = vpack.c.bf16 %v39_v33, %v36_v32  ;;  %v82_v41 = vpack.c.bf16 %v46_v39, %v43_v38  ;;  %v35_v42 = vld [vmem:[#allocation2 + $0x30] sm:$0xff]  ;;  %v38_v43 = vld [vmem:[#allocation2 + $0x48] sm:$0xff] }
  0x1f   :  { %636 = vmatprep.subr.bf16.mxu1 %v677_v12  ;;  %v79_v40 = vpack.c.bf16 %v40_v36, %v37_v35  ;;  %v42_v44 = vld [vmem:[#allocation2 + $0x68] sm:$0xff]  ;;  %v45_v45 = vld [vmem:[#allocation2 + $0x80] sm:$0xff]  ;;  %v77_v46 = vpack.c.bf16 %v38_v43, %v35_v42  ;;  %v52_v48 = vld [vmem:[#allocation2 + $0xb8] sm:$0xff] }
  0x20   :  { %557 = vmatpush3.bf16.msra.mxu0 %v675_v10  ;;  %v49_v47 = vld [vmem:[#allocation2 + $0xa0] sm:$0xff]  ;;  %v81_v49 = vpack.c.bf16 %v45_v45, %v42_v44  ;;  %v55_v50 = vld [vmem:[#allocation2 + $0xd0] sm:$0xff]  ;;  %v58_v51 = vld [vmem:[#allocation2 + $0xe8] sm:$0xff] }
  0x21   :  { %558 = vmatprep.subr.bf16.mxu0 %v676_v11  ;;  %v85_v52 = vpack.c.bf16 %v52_v48, %v49_v47  ;;  %v88_v53 = vpack.c.bf16 %v58_v51, %v55_v50  ;;  %v41_v54 = vld [vmem:[#allocation2 + $0x60] sm:$0xff]  ;;  %v44_v55 = vld [vmem:[#allocation2 + $0x78] sm:$0xff]  ;;  %v51_v57 = vld [vmem:[#allocation2 + $0xb0] sm:$0xff] }
  0x22   :  { %637 = vmatpush3.bf16.msra.mxu1 %v677_v12  ;;  %v48_v56 = vld [vmem:[#allocation2 + $0x98] sm:$0xff]  ;;  %v80_v58 = vpack.c.bf16 %v44_v55, %v41_v54  ;;  %v61_v59 = vld [vmem:[#allocation2 + $0x100] sm:$0xff]  ;;  %v67_v62 = vld [vmem:[#allocation2 + $0x130] sm:$0xff] }
  0x23   :  { %638 = vmatprep.subr.bf16.mxu1 %v680_v14  ;;  %v64_v60 = vld [vmem:[#allocation2 + $0x118] sm:$0xff]  ;;  %v84_v61 = vpack.c.bf16 %v51_v57, %v48_v56  ;;  %v70_v63 = vld [vmem:[#allocation2 + $0x148] sm:$0xff]  ;;  %v47_v2 = vld [vmem:[#allocation2 + $0x90] sm:$0xff] }
  0x24   :  { %559 = vmatpush3.bf16.msra.mxu0 %v678_v13  ;;  %v91_v0 = vpack.c.bf16 %v64_v60, %v61_v59  ;;  %v94_v1 = vpack.c.bf16 %v70_v63, %v67_v62  ;;  %v50_v3 = vld [vmem:[#allocation2 + $0xa8] sm:$0xff]  ;;  %v57_v5 = vld [vmem:[#allocation2 + $0xe0] sm:$0xff]  ;;  %v56_v11 = vld [vmem:[#allocation2 + $0xd8] sm:$0xff] }
  0x25   :  { %560 = vmatprep.subr.bf16.mxu0 %v679_v15  ;;  %v54_v4 = vld [vmem:[#allocation2 + $0xc8] sm:$0xff]  ;;  %v83_v6 = vpack.c.bf16 %v50_v3, %v47_v2  ;;  %v73_v7 = vld [vmem:[#allocation2 + $0x160] sm:$0xff]  ;;  %v60_v12 = vld [vmem:[#allocation2 + $0xf8] sm:$0xff] }
  0x26   :  { %639 = vmatpush3.bf16.msra.mxu1 %v680_v14  ;;  %v87_v8 = vpack.c.bf16 %v57_v5, %v54_v4  ;;  %v97_v9 = vpack.c.bf16 %v73_v7, %v73_v7  ;;  %v53_v10 = vld [vmem:[#allocation2 + $0xc0] sm:$0xff]  ;;  %v63_v13 = vld [vmem:[#allocation2 + $0x110] sm:$0xff]  ;;  %v72_v24 = vld [vmem:[#allocation2 + $0x158] sm:$0xff] }
  0x27   :  { %640 = vmatprep.subr.bf16.mxu1 %v683_v17  ;;  %v86_v14 = vpack.c.bf16 %v56_v11, %v53_v10  ;;  %v90_v15 = vpack.c.bf16 %v63_v13, %v60_v12  ;;  %v65_v22 = vld [vmem:[#allocation2 + $0x120] sm:$0xff]  ;;  %v96_v26 = vpack.c.bf16 %v72_v24, %v72_v24 }
  0x28   :  { %561 = vmatpush3.bf16.msra.mxu0 %v681_v16  ;;  %v59_v16 = vld [vmem:[#allocation2 + $0xf0] sm:$0xff] }
  0x29   :  { %562 = vmatprep.subr.bf16.mxu0 %v682_v18  ;;  %v66_v18 = vld [vmem:[#allocation2 + $0x128] sm:$0xff] }
  0x2a   :  { %641 = vmatpush3.bf16.msra.mxu1 %v683_v17  ;;  %v62_v17 = vld [vmem:[#allocation2 + $0x108] sm:$0xff] }
  0x2b   :  { %642 = vmatprep.subr.bf16.mxu1 %v686_v20 }
  0x2c   :  { %563 = vmatpush3.bf16.msra.mxu0 %v684_v19  ;;  %v69_v19 = vld [vmem:[#allocation2 + $0x140] sm:$0xff] }
  0x2d   :  { %564 = vmatprep.subr.bf16.mxu0 %v685_v23  ;;  %v93_v21 = vpack.c.bf16 %v69_v19, %v66_v18  ;;  %v68_v23 = vld [vmem:[#allocation2 + $0x138] sm:$0xff] }
  0x2e   :  { %643 = vmatpush3.bf16.msra.mxu1 %v686_v20  ;;  %v89_v20 = vpack.c.bf16 %v62_v17, %v59_v16  ;;  %v92_v25 = vpack.c.bf16 %v68_v23, %v65_v22 }
  0x2f   :  { %644 = vmatprep.subr.bf16.mxu1 %v688_v31 }
  0x30   :  { %565 = vmatpush3.bf16.msra.mxu0 %v687_v27  ;;  %v71_v27 = vld [vmem:[#allocation2 + $0x150] sm:$0xff] }
  0x31   :  { %v95_v28 = vpack.c.bf16 %v71_v27, %v71_v27 }
  0x32   :  { %645 = vmatpush3.bf16.msra.mxu1 %v688_v31  ;;  %v823_v31 = vld [vmem:[%s902_s2] ss:$0 sm:$0xff] }
  0x33   :  { %330 = vmatmul.mubr.bf16.vlgmr.msra.gmra.mrb[0].mxu0 %v74_v34 }
  0x34   :  { %337 = vmatprep.mubr.bf16.mxu0 %v78_v37 }
  0x35   :  { %647 = vmatmul.mubr.bf16.vlgmr.msra.gmra.mrb[0].mxu1 %v79_v40 }
  0x36   :  { %650 = vmatprep.mubr.bf16.mxu1 %v82_v41 }
  0x3b   :  { %338 = vmatmul.mubr.bf16.gmra.mrb[4].mxu0 %v77_v46 }
  0x3c   :  { %345 = vmatprep.mubr.bf16.mxu0 %v81_v49 }
  0x3d   :  { %651 = vmatmul.mubr.bf16.gmra.mrb[4].mxu1 %v85_v52 }
  0x3e   :  { %654 = vmatprep.mubr.bf16.mxu1 %v88_v53 }
  0x43   :  { %346 = vmatmul.mubr.bf16.gmra.mrb[8].mxu0 %v80_v58 }
  0x44   :  { %353 = vmatprep.mubr.bf16.mxu0 %v84_v61 }
  0x45   :  { %655 = vmatmul.mubr.bf16.gmra.mrb[8].mxu1 %v91_v0 }
  0x46   :  { %658 = vmatprep.mubr.bf16.mxu1 %v94_v1 }
  0x4b   :  { %354 = vmatmul.mubr.bf16.gmra.mrb[12].mxu0 %v83_v6 }
  0x4c   :  { %361 = vmatprep.mubr.bf16.mxu0 %v87_v8 }
  0x4d   :  { %659 = vmatmul.mubr.bf16.gmra.mrb[12].mxu1 %v97_v9 }
  0x53   :  { %362 = vmatmul.mubr.bf16.gmra.mrb[16].mxu0 %v86_v14 }
  0x54   :  { %369 = vmatprep.mubr.bf16.mxu0 %v90_v15 }
  0x5b   :  { %370 = vmatmul.mubr.bf16.gmra.mrb[20].mxu0 %v89_v20 }
  0x5c   :  { %377 = vmatprep.mubr.bf16.mxu0 %v93_v21 }
  0x63   :  { %378 = vmatmul.mubr.bf16.gmra.mrb[24].mxu0 %v92_v25 }
  0x64   :  { %385 = vmatprep.mubr.bf16.mxu0 %v96_v26 }
  0x6b   :  { %386 = vmatmul.mubr.bf16.gmra.mrb[28].mxu0 %v95_v28 }
 0x106   :  { %v566_v29 = vpop.f32.mrb[0].mxu0 }
 0x107   :  { %v567_v30 = vpop.f32.mrb[1].mxu0 }
 0x108   :  { %v568_v32 = vadd.f32 %v567_v30, %v566_v29  ;;  %v569_v33 = vpop.f32.mrb[2].mxu0  ;;  %v648_v35 = vpop.f32.mrb[0].mxu1 }
 0x109   :  { %v570_v34 = vpop.f32.mrb[3].mxu0  ;;  %v427_v38 = vpop.f32.mrb[1].mxu1 }
 0x10a   :  { %v571_v36 = vadd.f32 %v570_v34, %v569_v33  ;;  %v332_v37 = vadd.f32 %v568_v32, %v823_v31  ;;  %v649_v39 = vpop.f32.mrb[2].mxu1 }
 0x10b   :  { %v430_v42 = vpop.f32.mrb[3].mxu1 }
 0x10c   :  { %v428_v40 = vadd.f32 %v427_v38, %v332_v37  ;;  %v335_v41 = vadd.f32 %v571_v36, %v823_v31 }
 0x10e   :  { %v489_v43 = vmax.f32 %v428_v40, 0.0  ;;  %v431_v44 = vadd.f32 %v430_v42, %v335_v41  ;;  %v572_v45 = vpop.f32.mrb[4].mxu0 }
 0x10f   :  { %v573_v46 = vpop.f32.mrb[5].mxu0 }
 0x110   :  { %505 = vst.msk [vmem:[%s903_s3] sm:$0xff] %vm504_vm0, %v489_v43  ;;  %v490_v47 = vmax.f32 %v431_v44, 0.0  ;;  %v574_v48 = vadd.f32 %v573_v46, %v572_v45  ;;  %v575_v49 = vpop.f32.mrb[6].mxu0  ;;  %v652_v51 = vpop.f32.mrb[4].mxu1 }
 0x111   :  { %v576_v50 = vpop.f32.mrb[7].mxu0  ;;  %v443_v54 = vpop.f32.mrb[5].mxu1 }
 0x112   :  { %506 = vst.msk [vmem:[%s903_s3 + $0x8] sm:$0xff] %vm504_vm0, %v490_v47  ;;  %v340_v52 = vadd.f32 %v574_v48, %v823_v31  ;;  %v577_v53 = vadd.f32 %v576_v50, %v575_v49  ;;  %v653_v55 = vpop.f32.mrb[6].mxu1 }
 0x113   :  { %v446_v58 = vpop.f32.mrb[7].mxu1 }
 0x114   :  { %v436_v56 = vadd.f32 %v648_v35, %v340_v52  ;;  %v343_v57 = vadd.f32 %v577_v53, %v823_v31 }
 0x116   :  { %v491_v59 = vmax.f32 %v436_v56, 0.0  ;;  %v439_v60 = vadd.f32 %v649_v39, %v343_v57  ;;  %v578_v61 = vpop.f32.mrb[8].mxu0 }
 0x117   :  { %v579_v62 = vpop.f32.mrb[9].mxu0 }
 0x118   :  { %507 = vst.msk [vmem:[%s903_s3 + $0x10] sm:$0xff] %vm504_vm0, %v491_v59  ;;  %v492_v63 = vmax.f32 %v439_v60, 0.0  ;;  %v580_v0 = vadd.f32 %v579_v62, %v578_v61  ;;  %v581_v1 = vpop.f32.mrb[10].mxu0  ;;  %v656_v3 = vpop.f32.mrb[8].mxu1 }
 0x119   :  { %v582_v2 = vpop.f32.mrb[11].mxu0  ;;  %v459_v6 = vpop.f32.mrb[9].mxu1 }
 0x11a   :  { %508 = vst.msk [vmem:[%s903_s3 + $0x18] sm:$0xff] %vm504_vm0, %v492_v63  ;;  %v583_v4 = vadd.f32 %v582_v2, %v581_v1  ;;  %v348_v5 = vadd.f32 %v580_v0, %v823_v31  ;;  %v657_v7 = vpop.f32.mrb[10].mxu1 }
 0x11b   :  { %v462_v10 = vpop.f32.mrb[11].mxu1 }
 0x11c   :  { %v444_v8 = vadd.f32 %v443_v54, %v348_v5  ;;  %v351_v9 = vadd.f32 %v583_v4, %v823_v31 }
 0x11e   :  { %v493_v11 = vmax.f32 %v444_v8, 0.0  ;;  %v447_v12 = vadd.f32 %v446_v58, %v351_v9  ;;  %v584_v13 = vpop.f32.mrb[12].mxu0 }
 0x11f   :  { %v585_v14 = vpop.f32.mrb[13].mxu0 }
 0x120   :  { %509 = vst.msk [vmem:[%s903_s3 + $0x20] sm:$0xff] %vm504_vm0, %v493_v11  ;;  %v494_v15 = vmax.f32 %v447_v12, 0.0  ;;  %v586_v16 = vadd.f32 %v585_v14, %v584_v13  ;;  %v587_v17 = vpop.f32.mrb[14].mxu0  ;;  %v660_v19 = vpop.f32.mrb[12].mxu1 }
 0x121   :  { %v588_v18 = vpop.f32.mrb[15].mxu0  ;;  %v475_v22 = vpop.f32.mrb[13].mxu1 }
 0x122   :  { %510 = vst.msk [vmem:[%s903_s3 + $0x28] sm:$0xff] %vm504_vm0, %v494_v15  ;;  %v356_v20 = vadd.f32 %v586_v16, %v823_v31  ;;  %v589_v21 = vadd.f32 %v588_v18, %v587_v17  ;;  %v661_v23 = vpop.f32.mrb[14].mxu1 }
 0x123   :  { %v478_v26 = vpop.f32.mrb[15].mxu1 }
 0x124   :  { %v452_v24 = vadd.f32 %v652_v51, %v356_v20  ;;  %v359_v25 = vadd.f32 %v589_v21, %v823_v31 }
 0x126   :  { %v495_v27 = vmax.f32 %v452_v24, 0.0  ;;  %v455_v28 = vadd.f32 %v653_v55, %v359_v25  ;;  %v590_v29 = vpop.f32.mrb[16].mxu0 }
 0x127   :  { %v591_v30 = vpop.f32.mrb[17].mxu0 }
 0x128   :  { %511 = vst.msk [vmem:[%s903_s3 + $0x30] sm:$0xff] %vm504_vm0, %v495_v27  ;;  %v496_v32 = vmax.f32 %v455_v28, 0.0  ;;  %v592_v33 = vadd.f32 %v591_v30, %v590_v29  ;;  %v593_v34 = vpop.f32.mrb[18].mxu0 }
 0x129   :  { %v594_v35 = vpop.f32.mrb[19].mxu0 }
 0x12a   :  { %512 = vst.msk [vmem:[%s903_s3 + $0x38] sm:$0xff] %vm504_vm0, %v496_v32  ;;  %v595_v36 = vadd.f32 %v594_v35, %v593_v34  ;;  %v364_v37 = vadd.f32 %v592_v33, %v823_v31 }
 0x12c   :  { %v460_v38 = vadd.f32 %v459_v6, %v364_v37  ;;  %v367_v39 = vadd.f32 %v595_v36, %v823_v31 }
 0x12e   :  { %v497_v40 = vmax.f32 %v460_v38, 0.0  ;;  %v463_v41 = vadd.f32 %v462_v10, %v367_v39  ;;  %v596_v42 = vpop.f32.mrb[20].mxu0 }
 0x12f   :  { %v597_v43 = vpop.f32.mrb[21].mxu0 }
 0x130   :  { %513 = vst.msk [vmem:[%s903_s3 + $0x40] sm:$0xff] %vm504_vm0, %v497_v40  ;;  %v498_v44 = vmax.f32 %v463_v41, 0.0  ;;  %v598_v45 = vadd.f32 %v597_v43, %v596_v42  ;;  %v599_v46 = vpop.f32.mrb[22].mxu0 }
 0x131   :  { %v600_v47 = vpop.f32.mrb[23].mxu0 }
 0x132   :  { %514 = vst.msk [vmem:[%s903_s3 + $0x48] sm:$0xff] %vm504_vm0, %v498_v44  ;;  %v372_v48 = vadd.f32 %v598_v45, %v823_v31  ;;  %v601_v49 = vadd.f32 %v600_v47, %v599_v46 }
 0x134   :  { %v468_v50 = vadd.f32 %v656_v3, %v372_v48  ;;  %v375_v51 = vadd.f32 %v601_v49, %v823_v31 }
 0x136   :  { %v499_v52 = vmax.f32 %v468_v50, 0.0  ;;  %v471_v53 = vadd.f32 %v657_v7, %v375_v51  ;;  %v602_v54 = vpop.f32.mrb[24].mxu0 }
 0x137   :  { %v603_v55 = vpop.f32.mrb[25].mxu0 }
 0x138   :  { %515 = vst.msk [vmem:[%s903_s3 + $0x50] sm:$0xff] %vm504_vm0, %v499_v52  ;;  %v500_v56 = vmax.f32 %v471_v53, 0.0  ;;  %v604_v57 = vadd.f32 %v603_v55, %v602_v54  ;;  %v605_v58 = vpop.f32.mrb[26].mxu0 }
 0x139   :  { %v606_v59 = vpop.f32.mrb[27].mxu0 }
 0x13a   :  { %516 = vst.msk [vmem:[%s903_s3 + $0x58] sm:$0xff] %vm504_vm0, %v500_v56  ;;  %v607_v60 = vadd.f32 %v606_v59, %v605_v58  ;;  %v380_v61 = vadd.f32 %v604_v57, %v823_v31 }
 0x13c   :  { %v476_v62 = vadd.f32 %v475_v22, %v380_v61  ;;  %v383_v63 = vadd.f32 %v607_v60, %v823_v31 }
 0x13e   :  { %v501_v0 = vmax.f32 %v476_v62, 0.0  ;;  %v479_v1 = vadd.f32 %v478_v26, %v383_v63  ;;  %v608_v2 = vpop.f32.mrb[28].mxu0 }
 0x13f   :  { %v609_v3 = vpop.f32.mrb[29].mxu0 }
 0x140   :  { %517 = vst.msk [vmem:[%s903_s3 + $0x60] sm:$0xff] %vm504_vm0, %v501_v0  ;;  %v502_v4 = vmax.f32 %v479_v1, 0.0  ;;  %v610_v5 = vadd.f32 %v609_v3, %v608_v2  ;;  %v611_v6 = vpop.f32.mrb[30].mxu0 }
 0x141   :  { %v612_v7 = vpop.f32.mrb[31].mxu0 }
 0x142   :  { %518 = vst.msk [vmem:[%s903_s3 + $0x68] sm:$0xff] %vm504_vm0, %v502_v4  ;;  %v388_v8 = vadd.f32 %v610_v5, %v823_v31 }
 0x144   :  { %v484_v9 = vadd.f32 %v660_v19, %v388_v8 }
 0x146   :  { %v503_v10 = vmax.f32 %v484_v9, 0.0 }
 0x148   :  { %519 = vst.msk [vmem:[%s903_s3 + $0x70] sm:$0xff] %vm504_vm0, %v503_v10 }
 0x149   :  { %524 = vsyncpa [#allocation3], 1 }

</bundles_post_ra>
